<compile_context>
chip_gen: v7x
topology: tpu7x:2x2x1
jax: 0.10.0
libtpu: 0.0.40
codegen_flags: <defaults>
</compile_context>

<pallas_src>
import jax
import jax.numpy as jnp
from jax.experimental import pallas as pl
from jax.experimental.pallas import tpu as pltpu

EPS = 1e-9
MAX_TILE = 2048  # lane-tile cap: keeps double-buffered blocks tiny even on v7x


def _round_up(x, m):
    return (x + m - 1) // m * m


# ---------------------------------------------------------------------------
# Pallas kernel: per (grid-tile, batch) TPS transform, lane-dense layout.
# refs:
#   p_ref   : (3, T)        base-grid features [1; gx; gy]   (shared across batch)
#   x_ref   : (1, k, 2)     source control points            (per batch)
#   q_ref   : (1, k+3, 2)   solved TPS coefficients [W; A]   (per batch)
#   out_ref : (1, 2, T)     transformed grid (coords on sublanes, points on lanes)
# ---------------------------------------------------------------------------
def tps_grid_kernel(p_ref, x_ref, q_ref, out_ref):
    p = p_ref[...]               # (3, T)  rows: ones, gx, gy
    x = x_ref[0]                 # (k, 2)
    q = q_ref[0]                 # (k+3, 2)
    k = x.shape[0]

    gx = p[1:2, :]               # (1, T)
    gy = p[2:3, :]               # (1, T)

    # pairwise squared distance grid-point vs control-point, lane-dense (k, T)
    dx = gx - x[:, 0:1]          # (k, T)   (k,1) lane-bcast vs (1,T) sublane-bcast
    dy = gy - x[:, 1:2]          # (k, T)
    d2 = dx * dx + dy * dy       # (k, T)
    u = d2 * jnp.log(d2 + EPS)   # (k, T)   EUP log, 128 lanes busy

    # out[c, :] = sum_j W[j,c] * u[j,:]  +  sum_r A[r,c] * p[r,:]
    # (VPU multiplies + XLU cross-sublane reductions; no MXU)
    out_x = (jnp.sum(u * q[:k, 0:1], axis=0, keepdims=True)
             + jnp.sum(p * q[k:, 0:1], axis=0, keepdims=True))   # (1, T)
    out_y = (jnp.sum(u * q[:k, 1:2], axis=0, keepdims=True)
             + jnp.sum(p * q[k:, 1:2], axis=0, keepdims=True))   # (1, T)

    out_ref[0] = jnp.concatenate([out_x, out_y], axis=0)         # (2, T), unmasked vst


# ---------------------------------------------------------------------------
# Plain-JAX glue: base grid + small TPS linear solve for Q = [W; A].
# ---------------------------------------------------------------------------
def _base_grid(w, h):
    xs = jnp.linspace(-1.0, 1.0, w, dtype=jnp.float32)
    ys = jnp.linspace(-1.0, 1.0, h, dtype=jnp.float32)
    gx, gy = jnp.meshgrid(xs, ys)                          # (h, w); gx varies along w
    return jnp.stack([gx, gy], axis=-1).reshape(h * w, 2)  # (HW, 2)


def _solve_tps_weights(X, Y):
    # TODO(synk): the (k+3)x(k+3) dense solve (torch.solve) stays in plain JAX;
    # it is tiny and has no useful Pallas mapping.
    n, k = X.shape[:2]
    D2 = ((X[:, :, None, :] - X[:, None, :, :]) ** 2).sum(-1)        # (n, k, k)
    K = D2 * jnp.log(D2 + EPS)
    P = jnp.concatenate([jnp.ones((n, k, 1), jnp.float32), X], -1)   # (n, k, 3)
    Z = jnp.concatenate([Y, jnp.zeros((n, 3, 2), jnp.float32)], 1)   # (n, k+3, 2)
    L = jnp.zeros((n, k + 3, k + 3), jnp.float32)
    L = L.at[:, :k, :k].set(K)
    L = L.at[:, :k, k:].set(P)
    L = L.at[:, k:, :k].set(jnp.transpose(P, (0, 2, 1)))
    return jnp.linalg.solve(L, Z)                                     # Q (n, k+3, 2)


def tps_pallas(X, Y, w, h):
    X = X.astype(jnp.float32)
    Y = Y.astype(jnp.float32)
    n, k = X.shape[:2]
    HW = h * w

    # lane tile along the grid-point axis: multiple of 128, capped for VMEM.
    T = min(MAX_TILE, _round_up(HW, 128))
    HW_pad = _round_up(HW, T)
    num_tiles = HW_pad // T

    Q = _solve_tps_weights(X, Y)                           # (n, k+3, 2)

    # base-grid features [1; gx; gy], lane-dense, padded along the point axis
    g = _base_grid(w, h)                                   # (HW, 2)
    pfeat = jnp.concatenate([jnp.ones((1, HW), jnp.float32), g.T], axis=0)  # (3, HW)
    pfeat = jnp.pad(pfeat, ((0, 0), (0, HW_pad - HW)))     # (3, HW_pad)

    out = pl.pallas_call(
        tps_grid_kernel,
        out_shape=jax.ShapeDtypeStruct((n, 2, HW_pad), jnp.float32),
        grid=(num_tiles, n),                               # batch innermost: shared
        in_specs=[                                         # grid block not re-DMA'd
            pl.BlockSpec((3, T), lambda t, b: (0, t)),          # base grid (shared)
            pl.BlockSpec((1, k, 2), lambda t, b: (b, 0, 0)),    # X per batch
            pl.BlockSpec((1, k + 3, 2), lambda t, b: (b, 0, 0)),  # Q per batch
        ],
        out_specs=pl.BlockSpec((1, 2, T), lambda t, b: (b, 0, t)),
        compiler_params=pltpu.CompilerParams(
            dimension_semantics=("parallel", "arbitrary")),
        cost_estimate=pl.CostEstimate(
            flops=n * HW_pad * (7 * k + 16),
            transcendentals=n * HW_pad * k,
            bytes_accessed=4 * (3 * HW_pad + n * 2 * HW_pad
                                + n * (2 * k + 2 * (k + 3))),
        ),
    )(pfeat, X, Q)

    out = out[:, :, :HW]                                   # drop lane padding
    out = jnp.transpose(out, (0, 2, 1))                    # (n, HW, 2)
    return out.reshape(n, h, w, 2)


# ---------------------------------------------------------------------------
# Pure-JAX reference (mirrors the PyTorch forward exactly) for validation.
# ---------------------------------------------------------------------------
def tps_ref(X, Y, w, h):
    X = X.astype(jnp.float32)
    Y = Y.astype(jnp.float32)
    n, k = X.shape[:2]
    grid = _base_grid(w, h)[None]                                     # (1, HW, 2)
    Q = _solve_tps_weights(X, Y)
    W_, A_ = Q[:, :k], Q[:, k:]
    D2 = ((grid[:, :, None, :] - X[:, None, :, :]) ** 2).sum(-1)      # (n, HW, k)
    U = D2 * jnp.log(D2 + EPS)
    Pg = jnp.concatenate([jnp.ones((1, h * w, 1), jnp.float32), grid], -1)
    out = jnp.matmul(Pg, A_) + jnp.matmul(U, W_)
    return out.reshape(-1, h, w, 2)


if __name__ == "__main__":
    # small deterministic example: batch n=2, k=8 control points, 16x16 grid
    n, k, h, w = 2, 8, 16, 16
    key = jax.random.PRNGKey(0)
    kx, ky = jax.random.split(key)
    X = jax.random.uniform(kx, (n, k, 2), jnp.float32, minval=-1.0, maxval=1.0)
    # target control points = source + small deterministic perturbation
    Y = X + 0.1 * jax.random.normal(ky, (n, k, 2), jnp.float32)

    out = jax.block_until_ready(tps_pallas(X, Y, w, h))
    ref = jax.block_until_ready(tps_ref(X, Y, w, h))

    assert out.shape == (n, h, w, 2), out.shape
    assert jnp.all(jnp.isfinite(out))
    assert jnp.allclose(out, ref, atol=1e-3, rtol=1e-3), float(
        jnp.max(jnp.abs(out - ref)))

    print("KERNEL_OK")
</pallas_src>

<mosaic_0001>
module attributes {stable_mosaic.version = 11 : i64} {
  func.func @tps_grid_kernel(%arg0: i32, %arg1: i32, %arg2: memref<3x256xf32, #tpu.memory_space<vmem>>, %arg3: memref<1x8x2xf32, #tpu.memory_space<vmem>>, %arg4: memref<1x11x2xf32, #tpu.memory_space<vmem>>, %arg5: memref<1x2x256xf32, #tpu.memory_space<vmem>>) attributes {dimension_semantics = [#tpu.dimension_semantics<parallel>, #tpu.dimension_semantics<arbitrary>], iteration_bounds = array<i64: 1, 2>, scalar_prefetch = 0 : i64, scratch_operands = 0 : i64, tpu.core_type = #tpu.core_type<tc>, window_params = [{transform_indices = @transform_0, window_bounds = array<i64: 3, 256>}, {transform_indices = @transform_1, window_bounds = array<i64: 1, 8, 2>}, {transform_indices = @transform_2, window_bounds = array<i64: 1, 11, 2>}, {transform_indices = @transform_3, window_bounds = array<i64: 1, 2, 256>}]} {
    %c0 = arith.constant 0 : index
    %c0_0 = arith.constant 0 : index
    %0 = vector.load %arg2[%c0, %c0_0] : memref<3x256xf32, #tpu.memory_space<vmem>>, vector<3x256xf32>
    %c0_1 = arith.constant 0 : index
    %c0_2 = arith.constant 0 : index
    %c0_3 = arith.constant 0 : index
    %1 = vector.load %arg3[%c0_1, %c0_2, %c0_3] : memref<1x8x2xf32, #tpu.memory_space<vmem>>, vector<1x8x2xf32>
    %2 = vector.shape_cast %1 : vector<1x8x2xf32> to vector<8x2xf32>
    %c0_4 = arith.constant 0 : index
    %c0_5 = arith.constant 0 : index
    %c0_6 = arith.constant 0 : index
    %3 = vector.load %arg4[%c0_4, %c0_5, %c0_6] : memref<1x11x2xf32, #tpu.memory_space<vmem>>, vector<1x11x2xf32>
    %4 = vector.shape_cast %3 : vector<1x11x2xf32> to vector<11x2xf32>
    %5 = vector.extract_strided_slice %0 {offsets = [1, 0], sizes = [1, 256], strides = [1, 1]} : vector<3x256xf32> to vector<1x256xf32>
    %6 = vector.extract_strided_slice %0 {offsets = [2, 0], sizes = [1, 256], strides = [1, 1]} : vector<3x256xf32> to vector<1x256xf32>
    %7 = vector.extract_strided_slice %2 {offsets = [0, 0], sizes = [8, 1], strides = [1, 1]} : vector<8x2xf32> to vector<8x1xf32>
    %8 = vector.broadcast %5 : vector<1x256xf32> to vector<8x256xf32>
    %9 = vector.broadcast %7 : vector<8x1xf32> to vector<8x256xf32>
    %10 = arith.subf %8, %9 : vector<8x256xf32>
    %11 = vector.extract_strided_slice %2 {offsets = [0, 1], sizes = [8, 1], strides = [1, 1]} : vector<8x2xf32> to vector<8x1xf32>
    %12 = vector.broadcast %6 : vector<1x256xf32> to vector<8x256xf32>
    %13 = vector.broadcast %11 : vector<8x1xf32> to vector<8x256xf32>
    %14 = arith.subf %12, %13 : vector<8x256xf32>
    %15 = arith.mulf %10, %10 : vector<8x256xf32>
    %16 = arith.mulf %14, %14 : vector<8x256xf32>
    %17 = arith.addf %15, %16 : vector<8x256xf32>
    %cst = arith.constant 9.99999971E-10 : f32
    %18 = vector.broadcast %cst : f32 to vector<8x256xf32>
    %19 = arith.addf %17, %18 : vector<8x256xf32>
    %20 = math.log %19 : vector<8x256xf32>
    %21 = arith.mulf %17, %20 : vector<8x256xf32>
    %22 = vector.extract_strided_slice %4 {offsets = [0, 0], sizes = [8, 1], strides = [1, 1]} : vector<11x2xf32> to vector<8x1xf32>
    %23 = vector.broadcast %22 : vector<8x1xf32> to vector<8x256xf32>
    %24 = arith.mulf %21, %23 : vector<8x256xf32>
    %cst_7 = arith.constant dense<0.000000e+00> : vector<256xf32>
    %25 = vector.multi_reduction <add>, %24, %cst_7 [0] : vector<8x256xf32> to vector<256xf32>
    %26 = vector.shape_cast %25 : vector<256xf32> to vector<1x256xf32>
    %27 = vector.extract_strided_slice %4 {offsets = [8, 0], sizes = [3, 1], strides = [1, 1]} : vector<11x2xf32> to vector<3x1xf32>
    %28 = vector.broadcast %27 : vector<3x1xf32> to vector<3x256xf32>
    %29 = arith.mulf %0, %28 : vector<3x256xf32>
    %cst_8 = arith.constant dense<0.000000e+00> : vector<256xf32>
    %30 = vector.multi_reduction <add>, %29, %cst_8 [0] : vector<3x256xf32> to vector<256xf32>
    %31 = vector.shape_cast %30 : vector<256xf32> to vector<1x256xf32>
    %32 = arith.addf %26, %31 : vector<1x256xf32>
    %33 = vector.extract_strided_slice %4 {offsets = [0, 1], sizes = [8, 1], strides = [1, 1]} : vector<11x2xf32> to vector<8x1xf32>
    %34 = vector.broadcast %33 : vector<8x1xf32> to vector<8x256xf32>
    %35 = arith.mulf %21, %34 : vector<8x256xf32>
    %cst_9 = arith.constant dense<0.000000e+00> : vector<256xf32>
    %36 = vector.multi_reduction <add>, %35, %cst_9 [0] : vector<8x256xf32> to vector<256xf32>
    %37 = vector.shape_cast %36 : vector<256xf32> to vector<1x256xf32>
    %38 = vector.extract_strided_slice %4 {offsets = [8, 1], sizes = [3, 1], strides = [1, 1]} : vector<11x2xf32> to vector<3x1xf32>
    %39 = vector.broadcast %38 : vector<3x1xf32> to vector<3x256xf32>
    %40 = arith.mulf %0, %39 : vector<3x256xf32>
    %cst_10 = arith.constant dense<0.000000e+00> : vector<256xf32>
    %41 = vector.multi_reduction <add>, %40, %cst_10 [0] : vector<3x256xf32> to vector<256xf32>
    %42 = vector.shape_cast %41 : vector<256xf32> to vector<1x256xf32>
    %43 = arith.addf %37, %42 : vector<1x256xf32>
    %44 = tpu.concatenate %32, %43 in 0 : vector<1x256xf32>, vector<1x256xf32> -> vector<2x256xf32>
    %c0_11 = arith.constant 0 : index
    %c0_12 = arith.constant 0 : index
    %c0_13 = arith.constant 0 : index
    %45 = vector.load %arg5[%c0_11, %c0_12, %c0_13] : memref<1x2x256xf32, #tpu.memory_space<vmem>>, vector<1x2x256xf32>
    %46 = vector.shape_cast %45 : vector<1x2x256xf32> to vector<2x256xf32>
    %47 = vector.shape_cast %44 : vector<2x256xf32> to vector<1x2x256xf32>
    tpu.vector_store %arg5[%c0_11, %c0_12, %c0_13], %47 {strides = array<i32>} : memref<1x2x256xf32, #tpu.memory_space<vmem>>, vector<1x2x256xf32>,
    return
  }
  func.func @transform_0(%arg0: i32, %arg1: i32) -> (i32, i32) {
    %c0_i32 = arith.constant 0 : i32
    %c0_i32_0 = arith.constant 0 : i32
    return %c0_i32, %arg0 : i32, i32
  }
  func.func @transform_1(%arg0: i32, %arg1: i32) -> (i32, i32, i32) {
    %c0_i32 = arith.constant 0 : i32
    %c0_i32_0 = arith.constant 0 : i32
    %c0_i32_1 = arith.constant 0 : i32
    return %arg1, %c0_i32, %c0_i32_0 : i32, i32, i32
  }
  func.func @transform_2(%arg0: i32, %arg1: i32) -> (i32, i32, i32) {
    %c0_i32 = arith.constant 0 : i32
    %c0_i32_0 = arith.constant 0 : i32
    %c0_i32_1 = arith.constant 0 : i32
    return %arg1, %c0_i32, %c0_i32_0 : i32, i32, i32
  }
  func.func @transform_3(%arg0: i32, %arg1: i32) -> (i32, i32, i32) {
    %c0_i32 = arith.constant 0 : i32
    %c0_i32_0 = arith.constant 0 : i32
    return %arg1, %c0_i32, %arg0 : i32, i32, i32
  }
}

</mosaic_0001>

<bundles_post_ra>
// kernel: tpu_custom_call.1
= control target key start
LH: loop header
LB: loop body
LE: loop exit
PB: predicated region body
PF: predicated region fallthrough
CT: control target
= control target key end

     0   :  { %8 = vsyncpa [#allocation3], 0  ;;  %s834_s0 = inlined_call_operand.vmem [shape: f32[3,256], index: 0, kind: input, shape index: {}]   ;;  %s835_s1 = inlined_call_operand.vmem [shape: f32[2,8,2], index: 1, kind: input, shape index: {}]   ;;  %s836_s2 = inlined_call_operand.vmem [shape: f32[2,11,2], index: 2, kind: input, shape index: {}]   ;;  %s837_s3 = inlined_call_operand.hbm [shape: f32[2,2,256], index: 3, kind: output, shape index: {}]  }
   0x1   :  { %10 = vsyncpa [#allocation3 + $0x1], 0  ;;  %s710_s12 = smov 0   ;;  %s712_s13 = smov 0  }
   0x2   :  { %s714_s14 = smov 0   ;;  %s716_s15 = smov 0  }
   0x3   :  { %s718_s16 = smov 0   ;;  %s720_s17 = smov 0  }
   0x4 LB: > { %s521_s18 = sadd.s32 4294967295, %s684_s17   ;;  %s522_s19 = sadd.s32 4294967294, %s684_s17   ;;  %s684_s17 = sphi %s720_s17, %s16_s17   ;;  %s680_s16 = sphi %s718_s16, %s844_s16   ;;  %s676_s15 = sphi %s716_s15, %s843_s15   ;;  %s672_s14 = sphi %s714_s14, %s842_s14   ;;  %s668_s13 = sphi %s712_s13, %s841_s13   ;;  %s664_s12 = sphi %s710_s12, %s840_s12  }
   0x5   : > { %s25_s20 = sadd.s32 1, %s680_s16  ;;  %s115_s21 = sadd.s32 1, %s672_s14 }
   0x6   : > { %p26_p0 = scmp.ge.s32.totalorder %s25_s20, 2  ;;  %p125_p1 = scmp.ne.s32.totalorder %s672_s14, %s668_s13 }
   0x7   : > { %p126_p2 = scmp.eq.s32.totalorder %s521_s18, 1  ;;  %p131_p3 = scmp.ne.s32.totalorder %s668_s13, %s664_s12 }
   0x8   : > { %s846_s20 = smov (%p26_p0, %s25_s20), 0  ;;  %p132_p5 = scmp.eq.s32.totalorder %s522_s19, 1 }
   0x9   : > { %p750_p4 = por %p126_p2, %p125_p1  ;;  %s110_s23 = ssub.s32 %s680_s16, %s846_s20 }
   0xa   : > { %p526_p6 = scmp.ge.s32.totalorder %s684_s17, 1  ;;  %p113_p7 = scmp.eq.s32.totalorder %s110_s23, 0 }
   0xb   : > { %p757_p8 = por %p132_p5, %p131_p3  ;;  %p174_p9 = scmp.lt.s32.totalorder %s684_s17, 3 }
   0xc   : > { %s763_s25 = scalar_select %p113_p7, %s672_s14, %s115_s21  }
   0xd   : > { %p175_p10 = pnand %p526_p6, %p174_p9 }
   0xe   : > { %p213_p11 = scmp.lt.s32.totalorder (!%p175_p10), %s676_s15, 1  ;;  %v686_v0 = vmov (!%p175_p10), 0   ;;  %v687_v3 = vmov (!%p175_p10), 1   ;;  %v228_v5 = vlaneseq (!%p175_p10)  ;;  %v223_v9 = vld [vmem:[%s834_s0] sm:$0x77] (!%p175_p10)  ;;  %vm326_vm0 = vcmask (!%p175_p10), 1042432  }
   0xf   : > { %178 = sbr.rel (%p175_p10) target bundleno = 217 (0xd9), region = 32  ;;  %597 = vset.pattern.permute.xlu0 (!%p175_p10), %v686_v0  ;;  %599 = vset.pattern.permute.xlu1 (!%p175_p10), %v686_v0  ;;  %v688_v12 = vmov (!%p175_p10), 839922192   ;;  %s204_s10 = sand.u32 (!%p175_p10), 1, %s668_s13   ;;  %vm392_vm1 = vcmask (!%p175_p10), 1040384  }
  0x10   : > { %v229_v6 = vshrl.u32 (!%p175_p10), %v228_v5, 7  ;;  %v315_v13 = vunpack.c.l.s4 (!%p175_p10), %v688_v12  ;;  %s527_s11 = sshll.u32 (!%p175_p10), %s204_s10, 2  ;;  %s538_s18 = sshll.u32 (!%p175_p10), %s676_s15, 6 }
  0x11   : > { %s206_s19 = scalar_lea.vmem (!%p175_p10), [#allocation2], %s527_s11  ;;  %s689_s29 = smov (!%p175_p10), [#allocation2]  }
  0x12   : > { %v230_v7 = vsub.s32 (!%p175_p10), 1, %v229_v6  ;;  %v234_v8 = vsub.s32 (!%p175_p10), 5, %v229_v6  ;;  %v255_v10 = vsub.s32 (!%p175_p10), 2, %v229_v6  ;;  %v259_v11 = vsub.s32 (!%p175_p10), 6, %v229_v6  ;;  %s424_s21 = sshll.u32 (!%p175_p10), %s206_s19, 4  ;;  %s610_s30 = sshll.u32 (!%p175_p10), %s689_s29, 4  ;;  %s787_s21 = int_to_ptr.vmem [resolvable:$true] %s424_s21  ;;  %s611_s30 = int_to_ptr.vmem [resolvable:$false] %s610_s30 }
  0x13   : > { %v316_v18 = vunpack.c.0.s8 (!%p175_p10), %v315_v13  ;;  %p613_p1 = scmp.lt.s32.totalorder (!%p175_p10), %s787_s21, %s611_s30 }
  0x14   : > { %v231_v14 = vrot.slane (!%p175_p10), %v223_v9, %v230_v7  ;;  %v235_v15 = vrot.slane (!%p175_p10), %v223_v9, %v234_v8  ;;  %v256_v16 = vrot.slane (!%p175_p10), %v223_v9, %v255_v10  ;;  %v260_v17 = vrot.slane (!%p175_p10), %v223_v9, %v259_v11 }
  0x15   : > { %v319_v25 = vsub.s32 (!%p175_p10), %v316_v18, %v229_v6 }
  0x16   : > { %s214_s26 = scalar_select %p213_p11, %s676_s15, 1  ;;  %v241_v19 = vrot.slane %v231_v14, %v230_v7  ;;  %v245_v20 = vrot.slane %v235_v15, %v230_v7  ;;  %v266_v23 = vrot.slane %v256_v16, %v255_v10  ;;  %v270_v24 = vrot.slane %v260_v17, %v255_v10 }
  0x17   : > { %s408_s15 = scalar_lea.sflag [#allocation3], %s204_s10 }
  0x18   : > { %s528_s27 = sshll.u32 %s214_s26, 3  ;;  %s537_s28 = sshll.u32 %s214_s26, 4 }
  0x19   : > { %s216_s4 = scalar_lea.vmem %s835_s1, %s528_s27  ;;  %s221_s7 = scalar_lea.vmem %s836_s2, %s537_s28 }
  0x1a   : > { %v224_v1 = vld [vmem:[%s216_s4] sm:$0xff]  ;;  %v226_v2 = vld [vmem:[%s221_s7 + $0x8] sm:$0x7]  ;;  %s785_s27 = scalar_lea.hbm %s837_s3, %s538_s18  ;;  %s606_s28 = scalar_lea.vmem %s787_s21, 64 }
  0x1b   : > { %248 = vperm.xlu0 %597, %v224_v1   ;;  %312 = vperm.xlu1 %599, %v226_v2   ;;  %v225_v4 = vld [vmem:[%s221_s7] sm:$0xff]  ;;  %p607_p12 = scmp.ne.s32.totalorder %s787_s21, %s606_s28  ;;  %s612_s4 = scalar_lea.vmem %s611_s30, 128 }
  0x1c   : > { %p614_p2 = scmp.lt.s32.totalorder %s612_s4, %s606_s28 }
  0x1d   : > { %p608_p13 = pnand %p607_p12, %p750_p4 }
  0x1e   : > { %p615_p3 = por %p614_p2, %p613_p1 }
  0x1f   : > { %598 = vset.pattern.permute.xlu0 %v687_v3  ;;  %600 = vset.pattern.permute.xlu1 %v687_v3  ;;  %p609_p0 = pneg %p608_p13 }
  0x20   : > { %272 = vperm.xlu0 %598, %v224_v1   ;;  %362 = vperm.xlu1 %600, %v226_v2  }
  0x21   : > { %p616_p5 = pnand %p615_p3, %p609_p0 }
  0x24   : > { %344 = vperm.xlu0 %598, %v225_v4   ;;  %601 = vset.pattern.permute.xlu1 %v686_v0 }
  0x25   : > { %293 = vperm.xlu1 %601, %v225_v4  }
  0x9a   : > { %v249_v21 = vpop.permute.xlu0 %248  ;;  %v313_v22 = vpop.permute.xlu1 %312 }
  0x9b   : > { %v251_v26 = vsub.f32 %v241_v19, %v249_v21  ;;  %v252_v27 = vsub.f32 %v245_v20, %v249_v21  ;;  %v320_v32 = vrot.slane %v313_v22, %v319_v25 }
  0x9d   : > { %v277_v34 = vmul.f32 %v251_v26, %v251_v26  ;;  %v278_v35 = vmul.f32 %v252_v27, %v252_v27  ;;  %v322_v40 = vmul.f32 %v320_v32, %v223_v9 }
  0x9f   : > { %v273_v28 = vpop.permute.xlu0 %272  ;;  %v363_v29 = vpop.permute.xlu1 %362  ;;  %v324_v44 = vcombine.high %v322_v40, %v322_v40  ;;  %v327_v46 = vsel %vm326_vm0, %v322_v40, 0.0 }
  0xa0   : > { %v275_v30 = vsub.f32 %v266_v23, %v273_v28  ;;  %v276_v31 = vsub.f32 %v270_v24, %v273_v28  ;;  %v370_v33 = vrot.slane %v363_v29, %v319_v25  ;;  %v328_v50 = vrot.slane %v327_v46, 4 }
  0xa1   : > { %v334_v48 = vsel %vm326_vm0, %v324_v44, 0.0 }
  0xa2   : > { %v279_v36 = vmul.f32 %v275_v30, %v275_v30  ;;  %v280_v37 = vmul.f32 %v276_v31, %v276_v31  ;;  %v372_v41 = vmul.f32 %v370_v33, %v223_v9  ;;  %v335_v52 = vrot.slane %v334_v48, 4 }
  0xa3   : > { %v329_v57 = vadd.f32 %v328_v50, %v327_v46  ;;  %v345_v1 = vpop.permute.xlu0 %344 }
  0xa4   : > { %v281_v38 = vadd.f32 %v279_v36, %v277_v34  ;;  %v282_v39 = vadd.f32 %v280_v37, %v278_v35  ;;  %v374_v45 = vcombine.high %v372_v41, %v372_v41  ;;  %v376_v47 = vsel %vm326_vm0, %v372_v41, 0.0  ;;  %v294_v62 = vpop.permute.xlu1 %293 }
  0xa5   : > { %v377_v51 = vrot.slane %v376_v47, 4  ;;  %v336_v60 = vadd.f32 %v335_v52, %v334_v48  ;;  %v330_v3 = vrot.slane %v329_v57, 2 }
  0xa6   : > { %v283_v42 = vadd.f32 1e-09, %v281_v38  ;;  %v284_v43 = vadd.f32 1e-09, %v282_v39  ;;  %v383_v49 = vsel %vm326_vm0, %v374_v45, 0.0 }
  0xa7   : > { %v384_v53 = vrot.slane %v383_v49, 4  ;;  %v378_v58 = vadd.f32 %v377_v51, %v376_v47  ;;  %v337_v7 = vrot.slane %v336_v60, 2  ;;  %v331_v15 = vadd.f32 %v330_v3, %v329_v57 }
  0xa8   : > { %602 = vlog2.f32 %v283_v42 }
  0xa9   : > { %604 = vlog2.f32 %v284_v43  ;;  %v385_v61 = vadd.f32 %v384_v53, %v383_v49  ;;  %v379_v4 = vrot.slane %v378_v58, 2  ;;  %v338_v19 = vadd.f32 %v337_v7, %v336_v60 }
  0xaa   : > { %v332_v27 = vrot.slane %v331_v15, 1 }
  0xab   : > { %v386_v8 = vrot.slane %v385_v61, 2  ;;  %v380_v16 = vadd.f32 %v379_v4, %v378_v58  ;;  %v339_v31 = vrot.slane %v338_v19, 1 }
  0xad   : > { %v387_v20 = vadd.f32 %v386_v8, %v385_v61  ;;  %v381_v28 = vrot.slane %v380_v16, 1  ;;  %v340_v44 = vadd.f32 %v339_v31, %v338_v19 }
  0xaf   : > { %v388_v32 = vrot.slane %v387_v20, 1  ;;  %v382_v40 = vadd.f32 %v381_v28, %v380_v16 }
  0xb1   : > { %v389_v43 = vadd.f32 %v388_v32, %v387_v20 }
  0xb2   : > { %v603_v54 = vpop.eup %602 }
  0xb3   : > { %v605_v55 = vpop.eup %604  ;;  %v286_v56 = vmul.f32 0.6931472, %v603_v54 }
  0xb4   : > { %v288_v59 = vmul.f32 0.6931472, %v605_v55 }
  0xb5   : > { %v289_v63 = vmul.f32 %v286_v56, %v281_v38 }
  0xb6   : > { %v290_v0 = vmul.f32 %v288_v59, %v282_v39  ;;  %v333_v39 = vadd.f32 %v332_v27, %v331_v15 }
  0xb7   : > { %v347_v2 = vmul.f32 %v345_v1, %v289_v63  ;;  %v296_v5 = vmul.f32 %v294_v62, %v289_v63 }
  0xb8   : > { %v348_v6 = vmul.f32 %v345_v1, %v290_v0  ;;  %v297_v9 = vmul.f32 %v294_v62, %v290_v0 }
  0xb9   : > { %v349_v10 = vrot.slane %v347_v2, 4  ;;  %v298_v11 = vrot.slane %v296_v5, 4 }
  0xba   : > { %v355_v12 = vrot.slane %v348_v6, 4  ;;  %v304_v13 = vrot.slane %v297_v9, 4 }
  0xbb   : > { %v350_v14 = vadd.f32 %v349_v10, %v347_v2  ;;  %v299_v17 = vadd.f32 %v298_v11, %v296_v5 }
  0xbc   : > { %v356_v18 = vadd.f32 %v355_v12, %v348_v6  ;;  %v305_v21 = vadd.f32 %v304_v13, %v297_v9 }
  0xbd   : > { %v351_v22 = vrot.slane %v350_v14, 2  ;;  %v300_v23 = vrot.slane %v299_v17, 2 }
  0xbe   : > { %v357_v24 = vrot.slane %v356_v18, 2  ;;  %v306_v25 = vrot.slane %v305_v21, 2 }
  0xbf   : > { %v352_v26 = vadd.f32 %v351_v22, %v350_v14  ;;  %v301_v29 = vadd.f32 %v300_v23, %v299_v17 }
  0xc0   : > { %v358_v30 = vadd.f32 %v357_v24, %v356_v18  ;;  %v307_v33 = vadd.f32 %v306_v25, %v305_v21 }
  0xc1   : > { %v353_v34 = vrot.slane %v352_v26, 1  ;;  %v302_v35 = vrot.slane %v301_v29, 1 }
  0xc2   : > { %v359_v36 = vrot.slane %v358_v30, 1  ;;  %v308_v37 = vrot.slane %v307_v33, 1 }
  0xc3   : > { %v354_v38 = vadd.f32 %v353_v34, %v352_v26  ;;  %v303_v41 = vadd.f32 %v302_v35, %v301_v29 }
  0xc4   : > { %v360_v42 = vadd.f32 %v359_v36, %v358_v30  ;;  %v309_v45 = vadd.f32 %v308_v37, %v307_v33 }
  0xc5   : > { %v341_v46 = vadd.f32 %v333_v39, %v303_v41  ;;  %v390_v47 = vadd.f32 %v382_v40, %v354_v38 }
  0xc6   : > { %v342_v48 = vadd.f32 %v340_v44, %v309_v45  ;;  %v391_v49 = vadd.f32 %v389_v43, %v360_v42 }
  0xc7   : > { %v393_v50 = vsel %vm392_vm1, %v341_v46, %v390_v47 }
  0xc8   : > { %v394_v51 = vsel %vm392_vm1, %v342_v48, %v391_v49 }
  0xc9   : > { %v397_v52 = vcombine.low %v393_v50, %v394_v51 }
  0xcb   : > { %531 = vst.sshfl [vmem:[%s206_s19] sm:$0x33 pattern:$0x76325410] %v397_v52 }
  0xcc   : > { %619 = shalt.err (!%p616_p5)
}
  0xcd   : > { %s620_s5 = scalar_lea.hbm %s785_s27, 64  ;;  %s624_s8 = scalar_lea.hbm %s837_s3, 128 }
  0xce   : > { %p621_p6 = scmp.ne.s32.totalorder %s785_s27, %s620_s5  ;;  %p625_p10 = scmp.lt.u32.totalorder %s785_s27, %s837_s3 }
  0xcf   : > { %p626_p11 = scmp.lt.u32.totalorder %s624_s8, %s620_s5  ;;  %p628_p13 = scmp.lt.u32.totalorder %s620_s5, %s785_s27 }
  0xd0   : > { %p622_p7 = pnand %p621_p6, %p750_p4 }
  0xd1   : > { %p627_p12 = por %p626_p11, %p625_p10 }
  0xd2   : > { %p623_p9 = pneg %p622_p7 }
  0xd3   : > { %p629_p0 = por %p628_p13, %p627_p12 }
  0xd5   : > { %p630_p1 = pnand %p629_p0, %p623_p9 }
  0xd7   : > { %633 = shalt.err (!%p630_p1)
}
  0xd8   : > { %539 = dma.vmem_to_hbm [thread:$0]  (%p750_p4), %s787_s21, 64, %s785_s27, %s408_s15  }
  0xd9 PF: > { %p545_p2 = scmp.ge.s32.totalorder %s684_s17, 2  ;;  %s436_s11 = sand.u32 1, %s664_s12  }
  0xda   : > { %s437_s18 = scalar_lea.sflag [#allocation3], %s436_s11 }
  0xdb   : > { %p542_p3 = pnand %p545_p2, %p757_p8 }
  0xdd   : > { %659 = dma.done.wait (!%p542_p3), %s437_s18, 64  }
  0xde   : > { %661 = vsyncadd (!%p542_p3), %s437_s18, 4294967232  ;;  %s16_s17 = sadd.s32 1, %s684_s17   ;;  %s840_s12 = smov %s668_s13 }
  0xdf   : > { %p13_p5 = scmp.ge.s32.totalorder %s16_s17, 4   ;;  %s841_s13 = smov %s672_s14 }
  0xe0   : > { %s842_s14 = smov %s763_s25  ;;  %s843_s15 = smov %s680_s16 }
  0xe1   : > { %s844_s16 = smov %s846_s20  ;;  %15 = sbr.rel (!%p13_p5) target bundleno = 4 (0x4), region = 73 }
  0xe8   :  { %442 = vsyncpa [#allocation3], 1 }
  0xe9   :  { %444 = vsyncpa [#allocation3 + $0x1], 1 }

</bundles_post_ra>
